<compile_context>
chip_gen: v6e
topology: v6e:2x2x1
jax: 0.10.0
libtpu: 0.0.40
codegen_flags: <defaults>
</compile_context>

<pallas_src>
import jax
import jax.numpy as jnp
from jax.experimental import pallas as pl
from jax.experimental.pallas import tpu as pltpu


def _drop_path_kernel(scale_ref, x_ref, o_ref):
    # scale_ref: (TB, 1) float32 VMEM tile  -- per-sample scale = mask_b / keep_prob
    # x_ref    : (TB, TL) VMEM tile of the flattened activations
    # o_ref    : (TB, TL) VMEM output tile
    s = scale_ref[...]                                        # (TB, 1) f32
    o_ref[...] = (x_ref[...].astype(jnp.float32) * s).astype(o_ref.dtype)


def _choose_tiles(B, F, itemsize):
    """Pick a lane-dense (TB, TL) block for the flattened (B, F) activations."""
    TARGET = 2 * 1024 * 1024  # ~2 MiB / tile; in+out double-buffered => ~8 MiB live

    # Row (sublane) tile: multiple of 8 dividing B when possible, else the full B.
    TB = 8 if (B % 8 == 0) else B

    # Lane tile: largest multiple-of-128 divisor of F that fits the target,
    # otherwise the whole feature extent (full-dim blocks are always legal).
    if F % 128 == 0 and TB * F * itemsize > TARGET:
        max_lanes = max(128, (TARGET // (TB * itemsize)) // 128 * 128)
        TL = 128
        for cand in range(128, min(F, max_lanes) + 1, 128):
            if F % cand == 0:
                TL = cand
    else:
        TL = F

    # Grow TB (multiples of 8 that divide B) to amortize the ~0.35 us/step overhead.
    if B % 8 == 0:
        for cand in range(8, B + 1, 8):
            if B % cand == 0 and cand * TL * itemsize <= TARGET:
                TB = cand

    return TB, TL


def drop_path(x, drop_prob, training, key):
    """Pallas DropPath. x: (B, ...) -- mask is per leading (batch) dim."""
    if (drop_prob is None) or (float(drop_prob) == 0.0) or (not training):
        return x

    keep_prob = 1.0 - float(drop_prob)
    B = x.shape[0]
    F = 1
    for d in x.shape[1:]:
        F *= int(d)
    F = max(F, 1)

    # Per-sample binarized mask, matching torch/timm: floor(keep_prob + U[0,1)).
    u = jax.random.uniform(key, (B,), dtype=jnp.float32)
    mask = jnp.floor(keep_prob + u)                               # 0.0 or 1.0
    scale = (mask / keep_prob).reshape(B, 1).astype(jnp.float32)  # (B, 1) f32, kept in f32

    x2 = x.reshape(B, F)
    TB, TL = _choose_tiles(B, F, x2.dtype.itemsize)
    grid = (B // TB, F // TL)

    out2 = pl.pallas_call(
        _drop_path_kernel,
        out_shape=jax.ShapeDtypeStruct((B, F), x.dtype),
        grid_spec=pltpu.PrefetchScalarGridSpec(
            num_scalar_prefetch=0,
            grid=grid,
            in_specs=[
                pl.BlockSpec((TB, 1), lambda i, j: (i, 0)),    # per-row scale (VMEM)
                pl.BlockSpec((TB, TL), lambda i, j: (i, j)),   # activation tile
            ],
            out_specs=pl.BlockSpec((TB, TL), lambda i, j: (i, j)),
        ),
        compiler_params=pltpu.CompilerParams(
            dimension_semantics=("parallel", "parallel"),  # no reduction axis
            vmem_limit_bytes=32 * 1024 * 1024,             # safe on v5e/v6e/v7x
        ),
    )(scale, x2)
    return out2.reshape(x.shape)


class DropPath:
    """Drop paths (Stochastic Depth) per sample (main path of residual blocks)."""

    def __init__(self, drop_prob=None):
        self.drop_prob = drop_prob
        self.training = True

    def __call__(self, x, key):
        return drop_path(x, self.drop_prob, self.training, key)

    def extra_repr(self) -> str:
        return "p={}".format(self.drop_prob)


if __name__ == "__main__":
    key = jax.random.PRNGKey(0)
    kx, kmask, kx2, kmask2 = jax.random.split(key, 4)

    # Small MAE-style token tensor: (batch, tokens, hidden).
    B, N, D = 2, 8, 32
    x = jax.random.normal(kx, (B, N, D), dtype=jnp.float32)

    mod = DropPath(drop_prob=0.25)
    mod.training = True
    y = jax.block_until_ready(mod(x, kmask))

    # Reference check in plain JAX (same mask derivation, f32 math).
    keep_prob = 1.0 - 0.25
    u = jax.random.uniform(kmask, (B,), dtype=jnp.float32)
    mask = jnp.floor(keep_prob + u)
    y_ref = x * (mask / keep_prob)[:, None, None]
    assert jnp.allclose(y, y_ref, atol=1e-6, rtol=1e-6)

    # Eval mode / zero drop_prob -> identity.
    mod.training = False
    y_eval = jax.block_until_ready(mod(x, kmask))
    assert jnp.allclose(y_eval, x)

    # bf16 path with batch divisible by 8 (exercises multi-row lane-dense tiles).
    mod.training = True
    B2, N2, D2 = 8, 16, 192
    xb = jax.random.normal(kx2, (B2, N2, D2), dtype=jnp.bfloat16)
    yb = jax.block_until_ready(mod(xb, kmask2))
    u2 = jax.random.uniform(kmask2, (B2,), dtype=jnp.float32)
    mask2 = jnp.floor(keep_prob + u2)
    yb_ref = (xb.astype(jnp.float32) * (mask2 / keep_prob)[:, None, None]).astype(jnp.bfloat16)
    assert jnp.allclose(yb.astype(jnp.float32), yb_ref.astype(jnp.float32),
                        atol=1e-2, rtol=1e-2)

    print("KERNEL_OK")
</pallas_src>

<mosaic_0001>
module attributes {stable_mosaic.version = 11 : i64} {
  func.func @_drop_path_kernel(%arg0: i32, %arg1: i32, %arg2: memref<2x1xf32, #tpu.memory_space<vmem>>, %arg3: memref<2x256xf32, #tpu.memory_space<vmem>>, %arg4: memref<2x256xf32, #tpu.memory_space<vmem>>) attributes {dimension_semantics = [#tpu.dimension_semantics<parallel>, #tpu.dimension_semantics<parallel>], iteration_bounds = array<i64: 1, 1>, scalar_prefetch = 0 : i64, scratch_operands = 0 : i64, tpu.core_type = #tpu.core_type<tc>, window_params = [{transform_indices = @transform_0, window_bounds = array<i64: 2, 1>}, {transform_indices = @transform_1, window_bounds = array<i64: 2, 256>}, {transform_indices = @transform_2, window_bounds = array<i64: 2, 256>}]} {
    %c0 = arith.constant 0 : index
    %c0_0 = arith.constant 0 : index
    %0 = vector.load %arg2[%c0, %c0_0] : memref<2x1xf32, #tpu.memory_space<vmem>>, vector<2x1xf32>
    %c0_1 = arith.constant 0 : index
    %c0_2 = arith.constant 0 : index
    %1 = vector.load %arg3[%c0_1, %c0_2] : memref<2x256xf32, #tpu.memory_space<vmem>>, vector<2x256xf32>
    %2 = vector.broadcast %0 : vector<2x1xf32> to vector<2x256xf32>
    %3 = arith.mulf %1, %2 : vector<2x256xf32>
    %c0_3 = arith.constant 0 : index
    %c0_4 = arith.constant 0 : index
    %4 = vector.load %arg4[%c0_3, %c0_4] : memref<2x256xf32, #tpu.memory_space<vmem>>, vector<2x256xf32>
    tpu.vector_store %arg4[%c0_3, %c0_4], %3 {strides = array<i32>} : memref<2x256xf32, #tpu.memory_space<vmem>>, vector<2x256xf32>,
    return
  }
  func.func @transform_0(%arg0: i32, %arg1: i32) -> (i32, i32) {
    %c0_i32 = arith.constant 0 : i32
    %c0_i32_0 = arith.constant 0 : i32
    return %arg0, %c0_i32 : i32, i32
  }
  func.func @transform_1(%arg0: i32, %arg1: i32) -> (i32, i32) {
    %c0_i32 = arith.constant 0 : i32
    return %arg0, %arg1 : i32, i32
  }
  func.func @transform_2(%arg0: i32, %arg1: i32) -> (i32, i32) {
    %c0_i32 = arith.constant 0 : i32
    return %arg0, %arg1 : i32, i32
  }
}

</mosaic_0001>

<bundles_post_ra>
// kernel: tpu_custom_call.1
= control target key start
LH: loop header
LB: loop body
LE: loop exit
PB: predicated region body
PF: predicated region fallthrough
CT: control target
= control target key end

     0   :  { %v68_v1 = vmov 0   ;;  %s95_s0 = inlined_call_operand.vmem [shape: f32[2,1], index: 0, kind: input, shape index: {}]   ;;  %s96_s1 = inlined_call_operand.vmem [shape: f32[2,256], index: 1, kind: input, shape index: {}]   ;;  %s97_s2 = inlined_call_operand.hbm [shape: f32[2,256], index: 2, kind: output, shape index: {}]  }
   0x1   :  { %v12_v0 = vld [vmem:[%s95_s0] sm:$0x3]  ;;  %45 = vset.pattern.permute.xlu0 %v68_v1 }
   0x2   :  { %7 = vsyncpa [#allocation3], 0  ;;  %16 = vperm.xlu0 %45, %v12_v0   ;;  %v69_v2 = vmov 269488144   ;;  %v21_v4 = vlaneseq  ;;  %v13_v9 = vld [vmem:[%s96_s1] sm:$0xf] }
   0x3   :  { %v19_v3 = vunpack.c.l.s4 %v69_v2  ;;  %s70_s13 = smov [#allocation2]  }
   0x4   :  { %v22_v6 = vshrl.u32 %v21_v4, 7  ;;  %s34_s14 = sshll.u32 %s70_s13, 4  ;;  %s35_s14 = int_to_ptr.vmem [resolvable:$true] %s34_s14 }
   0x5   :  { %v20_v5 = vunpack.c.0.s8 %v19_v3  ;;  %s46_s0 = scalar_lea.vmem %s35_s14, 64  ;;  %p51_p1 = scmp.lt.s32.totalorder %s35_s14, %s35_s14 }
   0x6   :  { %p47_p0 = scmp.ne.s32.totalorder %s35_s14, %s46_s0  ;;  %p52_p2 = scmp.lt.s32.totalorder %s46_s0, %s46_s0 }
   0x7   :  { %v23_v7 = vsub.s32 %v20_v5, %v22_v6 }
   0x8   :  { %p53_p3 = por %p52_p2, %p51_p1 }
   0xa   :  { %p54_p4 = pnand %p53_p3, %p47_p0 }
  0x7d   :  { %v17_v8 = vpop.permute.xlu0 %16 }
  0x7e   :  { %v24_v10 = vrot.slane %v17_v8, %v23_v7 }
  0x80   :  { %v26_v11 = vmul.f32 %v24_v10, %v13_v9 }
  0x82   :  { %27 = vst [vmem:[#allocation2] sm:$0xf] %v26_v11 }
  0x83   :  { %57 = shalt.err (!%p54_p4)
}
  0x84   :  { %37 = dma.vmem_to_hbm [thread:$0]  %s35_s14, 64, %s97_s2, [#allocation3]  }
  0x85   :  { %66 = dma.done.wait [#allocation3], 64  }
  0x86   :  { %67 = vsyncadd [#allocation3], 4294967232 }
  0x87   :  { %41 = vsyncpa [#allocation3], 1 }

</bundles_post_ra>
